<compile_context>
chip_gen: v5e
topology: v5e:2x2
jax: 0.10.0
libtpu: 0.0.40
codegen_flags: <defaults>
</compile_context>

<pallas_src>
import functools

import jax
import jax.numpy as jnp
from jax.experimental import pallas as pl
from jax.experimental.pallas import tpu as pltpu

BN_EPS = 1e-5
LANE = 128


def _round_up(x, m):
    return ((x + m - 1) // m) * m


# ----------------------------- kernel -----------------------------------------


def _bn_scale_shift(y, gamma, beta):
    """Training-mode BatchNorm1d folded to one per-feature scale/shift.

    Single data pass for statistics (sum & sum-of-squares -> XLU sublane reductions),
    then one y * scale + shift pass.  Everything stays in f32 (inputs are already
    roughly normalized per-column, so the E[y^2] - E[y]^2 form is safe here).
    """
    n = y.shape[0]
    inv_n = 1.0 / n
    s = jnp.sum(y, axis=0, keepdims=True)
    s2 = jnp.sum(y * y, axis=0, keepdims=True)
    mean = s * inv_n
    var = s2 * inv_n - mean * mean                     # biased variance (torch train mode)
    scale = gamma * jax.lax.rsqrt(var + BN_EPS)        # EUP rsqrt
    shift = beta - mean * scale
    return y * scale + shift


def _softplus(y):
    # numerically stable softplus == torch.nn.functional.softplus
    return jnp.maximum(y, 0.0) + jnp.log(1.0 + jnp.exp(-jnp.abs(y)))


def _fused_mlp_kernel(x_ref, gb_ref, *rest):
    """bn_in -> [matmul -> bn -> tanh]* -> matmul -> bn -> softplus, all in VMEM.

    rest = (w_ref_0, ..., w_ref_{L-1}, o_ref).  Weights are bf16, pre-transposed to
    (fin, fout_pad).  gb_ref rows: [gamma_bn_in, beta_bn_in, gamma_bn_0, beta_bn_0, ...].
    Padded weight rows/columns are zero, so padded activation columns stay exactly 0
    through every hidden layer.
    """
    o_ref = rest[-1]
    w_refs = rest[:-1]
    n_lin = len(w_refs)

    # bn_in on the raw (unpadded) input -- no activation.
    fin = x_ref.shape[1]
    x = _bn_scale_shift(x_ref[...], gb_ref[0:1, 0:fin], gb_ref[1:2, 0:fin])

    for i, w_ref in enumerate(w_refs):
        # MXU matmul in bf16 with f32 accumulation.  Linear bias omitted: it is exactly
        # cancelled by the batch-mean subtraction of the BN that follows.
        y = jnp.dot(x.astype(jnp.bfloat16), w_ref[...],
                    preferred_element_type=jnp.float32)
        width = w_ref.shape[1]
        g = gb_ref[2 * (i + 1):2 * (i + 1) + 1, 0:width]
        b = gb_ref[2 * (i + 1) + 1:2 * (i + 1) + 2, 0:width]
        y = _bn_scale_shift(y, g, b)
        # TODO(synk): if the EUP slot ever binds at large N, replace jnp.tanh on the
        # hidden layers with a VPU polynomial approximation.
        x = jnp.tanh(y) if i < n_lin - 1 else _softplus(y)

    o_ref[...] = x


# ----------------------------- wrapper -----------------------------------------


def _full_spec(shape):
    return pl.BlockSpec(shape, lambda: (0,) * len(shape))


@functools.partial(jax.jit, static_argnames=("output_size",))
def nn_forward(params, x, output_size):
    ws = params["weights"]                     # list of (fin_i, fout_pad_i), bf16
    gb = params["gb"]                          # (2 * num_bn, max_pad), f32
    n = x.shape[0]
    out_pad = ws[-1].shape[1]

    # Explicit VMEM cap sized from the v7x 64 MiB-per-TC budget (generous headroom for
    # the tiny working set here).
    work = x.size * 4 + gb.size * 4 + sum(w.size * 2 for w in ws) + n * out_pad * 4
    vmem_limit = int(min(64 * 1024 * 1024, max(16 * 1024 * 1024, 8 * work)))

    out = pl.pallas_call(
        _fused_mlp_kernel,
        out_shape=jax.ShapeDtypeStruct((n, out_pad), jnp.float32),
        in_specs=[_full_spec(x.shape), _full_spec(gb.shape)]
                 + [_full_spec(w.shape) for w in ws],
        out_specs=_full_spec((n, out_pad)),    # lane-dense output (last dim = 128k)
        compiler_params=pltpu.CompilerParams(vmem_limit_bytes=vmem_limit),
    )(x, gb, *ws)
    return out[:, :output_size]


# ----------------------------- params ------------------------------------------


def init_params(key, input_size, hidden_sizes, output_size):
    """Matches the torch module's parameter init (Linear weights ~ N(0,1); BN gamma=1,
    beta=0).  Linear biases are not materialized (cancelled by training-mode BN).
    Returns kernel params (padded / transposed / bf16) and raw f32 torch-layout weights
    for the pure-JAX references."""
    sizes = [input_size] + list(hidden_sizes) + [output_size]
    n_lin = len(sizes) - 1

    raw_weights = []              # torch layout (fout, fin), f32
    weights = []                  # kernel layout (prev_cols, fout_pad), bf16
    prev_cols = input_size        # column count of the activation entering layer i
    for i in range(n_lin):
        fin, fout = sizes[i], sizes[i + 1]
        key, kw = jax.random.split(key)
        w = jax.random.normal(kw, (fout, fin), jnp.float32)      # init.normal_
        raw_weights.append(w)
        fout_pad = _round_up(fout, LANE)
        w_p = jnp.zeros((prev_cols, fout_pad), jnp.float32).at[:fin, :fout].set(w.T)
        weights.append(w_p.astype(jnp.bfloat16))
        prev_cols = fout_pad

    # Packed BN affine slab: rows [gamma_bn_in, beta_bn_in, gamma_bn_0, beta_bn_0, ...].
    num_bn = n_lin + 1
    max_pad = max(LANE, max(_round_up(s, LANE) for s in sizes))
    gb = jnp.tile(jnp.stack([jnp.ones((max_pad,), jnp.float32),
                             jnp.zeros((max_pad,), jnp.float32)], axis=0),
                  (num_bn, 1))

    return {"weights": weights, "gb": gb}, raw_weights, sizes


# ----------------------------- references (pure JAX) ---------------------------


def reference_forward_f32(raw_weights, x):
    """Exact torch-semantics training-mode forward in f32 (bias cancelled by BN)."""
    def bn(y):
        mean = y.mean(0, keepdims=True)
        var = ((y - mean) ** 2).mean(0, keepdims=True)
        return (y - mean) / jnp.sqrt(var + BN_EPS)

    n_lin = len(raw_weights)
    h = bn(x)
    for i, w in enumerate(raw_weights):
        h = bn(h @ w.T)
        h = jnp.tanh(h) if i < n_lin - 1 else jax.nn.softplus(h)
    return h


def reference_forward_bf16(raw_weights, x):
    """Reference mirroring the kernel arithmetic (bf16 matmuls, fused BN math)."""
    def bn(y):
        n = y.shape[0]
        s = y.sum(0, keepdims=True)
        s2 = (y * y).sum(0, keepdims=True)
        mean = s * (1.0 / n)
        var = s2 * (1.0 / n) - mean * mean
        scale = jax.lax.rsqrt(var + BN_EPS)
        return y * scale + (0.0 - mean * scale)

    n_lin = len(raw_weights)
    h = bn(x)
    for i, w in enumerate(raw_weights):
        y = jnp.dot(h.astype(jnp.bfloat16), w.T.astype(jnp.bfloat16),
                    preferred_element_type=jnp.float32)
        y = bn(y)
        if i < n_lin - 1:
            h = jnp.tanh(y)
        else:
            h = jnp.maximum(y, 0.0) + jnp.log(1.0 + jnp.exp(-jnp.abs(y)))
    return h


# ----------------------------- main --------------------------------------------

if __name__ == "__main__":
    input_size = 16
    hidden_sizes = [32, 32]
    output_size = 8
    batch = 8

    key = jax.random.PRNGKey(0)
    key, kx = jax.random.split(key)
    x = jax.random.normal(kx, (batch, input_size), jnp.float32)

    params, raw_weights, sizes = init_params(key, input_size, hidden_sizes, output_size)

    out = nn_forward(params, x, output_size=output_size)
    out = jax.block_until_ready(out)

    assert out.shape == (batch, output_size)
    assert bool(jnp.all(jnp.isfinite(out)))
    assert bool(jnp.all(out >= 0.0))          # softplus output is non-negative

    # Tight check against a reference that mirrors the kernel arithmetic (bf16 dots).
    ref_bf16 = reference_forward_bf16(raw_weights, x)
    assert bool(jnp.allclose(out, ref_bf16, atol=2e-3, rtol=2e-3))

    # Loose check against the exact f32 torch-semantics forward (loose only because of
    # intentional bf16 matmul rounding; still catches any semantic error).
    ref_f32 = reference_forward_f32(raw_weights, x)
    assert bool(jnp.allclose(out, ref_f32, atol=1e-1, rtol=1e-1))

    print("KERNEL_OK")
</pallas_src>

<mosaic_0001>
module attributes {stable_mosaic.version = 11 : i64} {
  func.func @_fused_mlp_kernel(%arg0: memref<8x16xf32, #tpu.memory_space<vmem>>, %arg1: memref<8x128xf32, #tpu.memory_space<vmem>>, %arg2: memref<16x128xbf16, #tpu.memory_space<vmem>>, %arg3: memref<128x128xbf16, #tpu.memory_space<vmem>>, %arg4: memref<128x128xbf16, #tpu.memory_space<vmem>>, %arg5: memref<8x128xf32, #tpu.memory_space<vmem>>) attributes {dimension_semantics = [], scalar_prefetch = 0 : i64, scratch_operands = 0 : i64, tpu.core_type = #tpu.core_type<tc>} {
    %c0 = arith.constant 0 : index
    %c0_0 = arith.constant 0 : index
    %0 = vector.load %arg0[%c0, %c0_0] : memref<8x16xf32, #tpu.memory_space<vmem>>, vector<8x16xf32>
    %c0_1 = arith.constant 0 : index
    %c0_2 = arith.constant 0 : index
    %1 = vector.load %arg1[%c0_1, %c0_2] : memref<8x128xf32, #tpu.memory_space<vmem>>, vector<1x16xf32>
    %c1 = arith.constant 1 : index
    %c0_3 = arith.constant 0 : index
    %2 = vector.load %arg1[%c1, %c0_3] : memref<8x128xf32, #tpu.memory_space<vmem>>, vector<1x16xf32>
    %cst = arith.constant dense<0.000000e+00> : vector<16xf32>
    %3 = vector.multi_reduction <add>, %0, %cst [0] : vector<8x16xf32> to vector<16xf32>
    %4 = vector.shape_cast %3 : vector<16xf32> to vector<1x16xf32>
    %5 = arith.mulf %0, %0 : vector<8x16xf32>
    %cst_4 = arith.constant dense<0.000000e+00> : vector<16xf32>
    %6 = vector.multi_reduction <add>, %5, %cst_4 [0] : vector<8x16xf32> to vector<16xf32>
    %7 = vector.shape_cast %6 : vector<16xf32> to vector<1x16xf32>
    %cst_5 = arith.constant 1.250000e-01 : f32
    %8 = vector.broadcast %cst_5 : f32 to vector<1x16xf32>
    %9 = arith.mulf %4, %8 : vector<1x16xf32>
    %cst_6 = arith.constant 1.250000e-01 : f32
    %10 = vector.broadcast %cst_6 : f32 to vector<1x16xf32>
    %11 = arith.mulf %7, %10 : vector<1x16xf32>
    %12 = arith.mulf %9, %9 : vector<1x16xf32>
    %13 = arith.subf %11, %12 : vector<1x16xf32>
    %cst_7 = arith.constant 9.99999974E-6 : f32
    %14 = vector.broadcast %cst_7 : f32 to vector<1x16xf32>
    %15 = arith.addf %13, %14 : vector<1x16xf32>
    %16 = math.rsqrt %15 : vector<1x16xf32>
    %17 = arith.mulf %1, %16 : vector<1x16xf32>
    %18 = arith.mulf %9, %17 : vector<1x16xf32>
    %19 = arith.subf %2, %18 : vector<1x16xf32>
    %20 = vector.broadcast %17 : vector<1x16xf32> to vector<8x16xf32>
    %21 = arith.mulf %0, %20 : vector<8x16xf32>
    %22 = vector.broadcast %19 : vector<1x16xf32> to vector<8x16xf32>
    %23 = arith.addf %21, %22 : vector<8x16xf32>
    %24 = arith.truncf %23 : vector<8x16xf32> to vector<8x16xbf16>
    %c0_8 = arith.constant 0 : index
    %c0_9 = arith.constant 0 : index
    %25 = vector.load %arg2[%c0_8, %c0_9] : memref<16x128xbf16, #tpu.memory_space<vmem>>, vector<16x128xbf16>
    %cst_10 = arith.constant dense<0.000000e+00> : vector<8x128xf32>
    %26 = tpu.matmul %24, %25, %cst_10 {dimension_numbers = #tpu.dot_dimension_numbers<[1], [0], [0], [1], [0, 0, 1, 1], [], []>} : vector<8x16xbf16>, vector<16x128xbf16>, vector<8x128xf32> -> vector<8x128xf32>
    %c2 = arith.constant 2 : index
    %c0_11 = arith.constant 0 : index
    %27 = vector.load %arg1[%c2, %c0_11] : memref<8x128xf32, #tpu.memory_space<vmem>>, vector<1x128xf32>
    %c3 = arith.constant 3 : index
    %c0_12 = arith.constant 0 : index
    %28 = vector.load %arg1[%c3, %c0_12] : memref<8x128xf32, #tpu.memory_space<vmem>>, vector<1x128xf32>
    %cst_13 = arith.constant dense<0.000000e+00> : vector<128xf32>
    %29 = vector.multi_reduction <add>, %26, %cst_13 [0] : vector<8x128xf32> to vector<128xf32>
    %30 = vector.shape_cast %29 : vector<128xf32> to vector<1x128xf32>
    %31 = arith.mulf %26, %26 : vector<8x128xf32>
    %cst_14 = arith.constant dense<0.000000e+00> : vector<128xf32>
    %32 = vector.multi_reduction <add>, %31, %cst_14 [0] : vector<8x128xf32> to vector<128xf32>
    %33 = vector.shape_cast %32 : vector<128xf32> to vector<1x128xf32>
    %cst_15 = arith.constant 1.250000e-01 : f32
    %34 = vector.broadcast %cst_15 : f32 to vector<1x128xf32>
    %35 = arith.mulf %30, %34 : vector<1x128xf32>
    %cst_16 = arith.constant 1.250000e-01 : f32
    %36 = vector.broadcast %cst_16 : f32 to vector<1x128xf32>
    %37 = arith.mulf %33, %36 : vector<1x128xf32>
    %38 = arith.mulf %35, %35 : vector<1x128xf32>
    %39 = arith.subf %37, %38 : vector<1x128xf32>
    %cst_17 = arith.constant 9.99999974E-6 : f32
    %40 = vector.broadcast %cst_17 : f32 to vector<1x128xf32>
    %41 = arith.addf %39, %40 : vector<1x128xf32>
    %42 = math.rsqrt %41 : vector<1x128xf32>
    %43 = arith.mulf %27, %42 : vector<1x128xf32>
    %44 = arith.mulf %35, %43 : vector<1x128xf32>
    %45 = arith.subf %28, %44 : vector<1x128xf32>
    %46 = vector.broadcast %43 : vector<1x128xf32> to vector<8x128xf32>
    %47 = arith.mulf %26, %46 : vector<8x128xf32>
    %48 = vector.broadcast %45 : vector<1x128xf32> to vector<8x128xf32>
    %49 = arith.addf %47, %48 : vector<8x128xf32>
    %50 = math.tanh %49 : vector<8x128xf32>
    %51 = arith.truncf %50 : vector<8x128xf32> to vector<8x128xbf16>
    %c0_18 = arith.constant 0 : index
    %c0_19 = arith.constant 0 : index
    %52 = vector.load %arg3[%c0_18, %c0_19] : memref<128x128xbf16, #tpu.memory_space<vmem>>, vector<128x128xbf16>
    %cst_20 = arith.constant dense<0.000000e+00> : vector<8x128xf32>
    %53 = tpu.matmul %51, %52, %cst_20 {dimension_numbers = #tpu.dot_dimension_numbers<[1], [0], [0], [1], [0, 0, 1, 1], [], []>} : vector<8x128xbf16>, vector<128x128xbf16>, vector<8x128xf32> -> vector<8x128xf32>
    %c4 = arith.constant 4 : index
    %c0_21 = arith.constant 0 : index
    %54 = vector.load %arg1[%c4, %c0_21] : memref<8x128xf32, #tpu.memory_space<vmem>>, vector<1x128xf32>
    %c5 = arith.constant 5 : index
    %c0_22 = arith.constant 0 : index
    %55 = vector.load %arg1[%c5, %c0_22] : memref<8x128xf32, #tpu.memory_space<vmem>>, vector<1x128xf32>
    %cst_23 = arith.constant dense<0.000000e+00> : vector<128xf32>
    %56 = vector.multi_reduction <add>, %53, %cst_23 [0] : vector<8x128xf32> to vector<128xf32>
    %57 = vector.shape_cast %56 : vector<128xf32> to vector<1x128xf32>
    %58 = arith.mulf %53, %53 : vector<8x128xf32>
    %cst_24 = arith.constant dense<0.000000e+00> : vector<128xf32>
    %59 = vector.multi_reduction <add>, %58, %cst_24 [0] : vector<8x128xf32> to vector<128xf32>
    %60 = vector.shape_cast %59 : vector<128xf32> to vector<1x128xf32>
    %cst_25 = arith.constant 1.250000e-01 : f32
    %61 = vector.broadcast %cst_25 : f32 to vector<1x128xf32>
    %62 = arith.mulf %57, %61 : vector<1x128xf32>
    %cst_26 = arith.constant 1.250000e-01 : f32
    %63 = vector.broadcast %cst_26 : f32 to vector<1x128xf32>
    %64 = arith.mulf %60, %63 : vector<1x128xf32>
    %65 = arith.mulf %62, %62 : vector<1x128xf32>
    %66 = arith.subf %64, %65 : vector<1x128xf32>
    %cst_27 = arith.constant 9.99999974E-6 : f32
    %67 = vector.broadcast %cst_27 : f32 to vector<1x128xf32>
    %68 = arith.addf %66, %67 : vector<1x128xf32>
    %69 = math.rsqrt %68 : vector<1x128xf32>
    %70 = arith.mulf %54, %69 : vector<1x128xf32>
    %71 = arith.mulf %62, %70 : vector<1x128xf32>
    %72 = arith.subf %55, %71 : vector<1x128xf32>
    %73 = vector.broadcast %70 : vector<1x128xf32> to vector<8x128xf32>
    %74 = arith.mulf %53, %73 : vector<8x128xf32>
    %75 = vector.broadcast %72 : vector<1x128xf32> to vector<8x128xf32>
    %76 = arith.addf %74, %75 : vector<8x128xf32>
    %77 = math.tanh %76 : vector<8x128xf32>
    %78 = arith.truncf %77 : vector<8x128xf32> to vector<8x128xbf16>
    %c0_28 = arith.constant 0 : index
    %c0_29 = arith.constant 0 : index
    %79 = vector.load %arg4[%c0_28, %c0_29] : memref<128x128xbf16, #tpu.memory_space<vmem>>, vector<128x128xbf16>
    %cst_30 = arith.constant dense<0.000000e+00> : vector<8x128xf32>
    %80 = tpu.matmul %78, %79, %cst_30 {dimension_numbers = #tpu.dot_dimension_numbers<[1], [0], [0], [1], [0, 0, 1, 1], [], []>} : vector<8x128xbf16>, vector<128x128xbf16>, vector<8x128xf32> -> vector<8x128xf32>
    %c6 = arith.constant 6 : index
    %c0_31 = arith.constant 0 : index
    %81 = vector.load %arg1[%c6, %c0_31] : memref<8x128xf32, #tpu.memory_space<vmem>>, vector<1x128xf32>
    %c7 = arith.constant 7 : index
    %c0_32 = arith.constant 0 : index
    %82 = vector.load %arg1[%c7, %c0_32] : memref<8x128xf32, #tpu.memory_space<vmem>>, vector<1x128xf32>
    %cst_33 = arith.constant dense<0.000000e+00> : vector<128xf32>
    %83 = vector.multi_reduction <add>, %80, %cst_33 [0] : vector<8x128xf32> to vector<128xf32>
    %84 = vector.shape_cast %83 : vector<128xf32> to vector<1x128xf32>
    %85 = arith.mulf %80, %80 : vector<8x128xf32>
    %cst_34 = arith.constant dense<0.000000e+00> : vector<128xf32>
    %86 = vector.multi_reduction <add>, %85, %cst_34 [0] : vector<8x128xf32> to vector<128xf32>
    %87 = vector.shape_cast %86 : vector<128xf32> to vector<1x128xf32>
    %cst_35 = arith.constant 1.250000e-01 : f32
    %88 = vector.broadcast %cst_35 : f32 to vector<1x128xf32>
    %89 = arith.mulf %84, %88 : vector<1x128xf32>
    %cst_36 = arith.constant 1.250000e-01 : f32
    %90 = vector.broadcast %cst_36 : f32 to vector<1x128xf32>
    %91 = arith.mulf %87, %90 : vector<1x128xf32>
    %92 = arith.mulf %89, %89 : vector<1x128xf32>
    %93 = arith.subf %91, %92 : vector<1x128xf32>
    %cst_37 = arith.constant 9.99999974E-6 : f32
    %94 = vector.broadcast %cst_37 : f32 to vector<1x128xf32>
    %95 = arith.addf %93, %94 : vector<1x128xf32>
    %96 = math.rsqrt %95 : vector<1x128xf32>
    %97 = arith.mulf %81, %96 : vector<1x128xf32>
    %98 = arith.mulf %89, %97 : vector<1x128xf32>
    %99 = arith.subf %82, %98 : vector<1x128xf32>
    %100 = vector.broadcast %97 : vector<1x128xf32> to vector<8x128xf32>
    %101 = arith.mulf %80, %100 : vector<8x128xf32>
    %102 = vector.broadcast %99 : vector<1x128xf32> to vector<8x128xf32>
    %103 = arith.addf %101, %102 : vector<8x128xf32>
    %cst_38 = arith.constant 0.000000e+00 : f32
    %104 = vector.broadcast %cst_38 : f32 to vector<8x128xf32>
    %105 = arith.maximumf %103, %104 : vector<8x128xf32>
    %106 = math.absf %103 : vector<8x128xf32>
    %cst_39 = arith.constant 0.000000e+00 : f32
    %107 = vector.broadcast %cst_39 : f32 to vector<8x128xf32>
    %108 = arith.subf %107, %106 : vector<8x128xf32>
    %109 = math.exp %108 : vector<8x128xf32>
    %cst_40 = arith.constant 1.000000e+00 : f32
    %110 = vector.broadcast %cst_40 : f32 to vector<8x128xf32>
    %111 = arith.addf %110, %109 : vector<8x128xf32>
    %112 = math.log %111 : vector<8x128xf32>
    %113 = arith.addf %105, %112 : vector<8x128xf32>
    %c0_41 = arith.constant 0 : index
    %c0_42 = arith.constant 0 : index
    %114 = vector.load %arg5[%c0_41, %c0_42] : memref<8x128xf32, #tpu.memory_space<vmem>>, vector<8x128xf32>
    tpu.vector_store %arg5[%c0_41, %c0_42], %113 {strides = array<i32>} : memref<8x128xf32, #tpu.memory_space<vmem>>, vector<8x128xf32>,
    return
  }
}

</mosaic_0001>

<bundles_post_ra>
// kernel: nn_forward.1
= control target key start
LH: loop header
LB: loop body
LE: loop exit
PB: predicated region body
PF: predicated region fallthrough
CT: control target
= control target key end

     0   :  { %10 = vsyncpa [#allocation3], 0  ;;  %s781_s0 = inlined_call_operand.hbm [shape: f32[8,16], index: 0, kind: input, shape index: {}]   ;;  %s782_s1 = inlined_call_operand.hbm [shape: f32[8,128], index: 1, kind: input, shape index: {}]   ;;  %s783_s2 = inlined_call_operand.hbm [shape: bf16[16,128], index: 2, kind: input, shape index: {}]   ;;  %s784_s3 = inlined_call_operand.hbm [shape: bf16[128,128], index: 3, kind: input, shape index: {}]   ;;  %s785_s4 = inlined_call_operand.hbm [shape: bf16[128,128], index: 4, kind: input, shape index: {}]   ;;  %s786_s5 = inlined_call_operand.hbm [shape: f32[8,128], index: 5, kind: output, shape index: {}]  }
   0x1   :  { %11 = vsyncpa [#allocation6], 0 }
   0x2   :  { %12 = vsyncpa [#allocation9], 0  ;;  %s30_s20 = sshll.u32 %s782_s1, 4  ;;  %s31_s20 = int_to_ptr.hbm [resolvable:$true] %s30_s20 }
   0x3   :  { %13 = vsyncpa [#allocation4], 0  ;;  %s722_s21 = smov [#allocation5]   ;;  %s53_s25 = sshll.u32 %s784_s3, 4  ;;  %s54_s25 = int_to_ptr.hbm [resolvable:$true] %s53_s25 }
   0x4   :  { %s32_s22 = sshll.u32 %s722_s21, 4  ;;  %s723_s26 = smov [#allocation8]   ;;  %s33_s22 = int_to_ptr.vmem [resolvable:$true] %s32_s22 }
   0x5   :  { %35 = dma.hbm_to_vmem [thread:$0]  %s31_s20, 128, %s33_s22, [#allocation6]  }
   0x6   :  { %s55_s27 = sshll.u32 %s723_s26, 4  ;;  %s19_s30 = sshll.u32 %s781_s0, 4  ;;  %s56_s27 = int_to_ptr.vmem [resolvable:$true] %s55_s27  ;;  %s20_s30 = int_to_ptr.hbm [resolvable:$true] %s19_s30 }
   0x7   :  { %s724_s1 = smov 64   ;;  %s725_s6 = smov 4  }
   0x8   :  { %61 = dma.hbm_to_vmem [thread:$0]  %s54_s25, 1024, %s56_s27, [#allocation9], %s724_s1, %s724_s1, %s725_s6  }
   0x9   :  { %s40_s9 = sshll.u32 %s783_s2, 4  ;;  %s726_s10 = smov [#allocation2]   ;;  %s41_s9 = int_to_ptr.hbm [resolvable:$true] %s40_s9 }
   0xa   :  { %s21_s11 = sshll.u32 %s726_s10, 4  ;;  %s727_s3 = smov [#allocation7]   ;;  %s22_s11 = int_to_ptr.vmem [resolvable:$true] %s21_s11 }
   0xb   :  { %24 = dma.hbm_to_vmem [thread:$0]  %s20_s30, 128, %s22_s11, [#allocation3]  }
   0xc   :  { %s42_s12 = sshll.u32 %s727_s3, 4  ;;  %s66_s0 = sshll.u32 %s785_s4, 4  ;;  %s43_s12 = int_to_ptr.vmem [resolvable:$true] %s42_s12  ;;  %s67_s0 = int_to_ptr.hbm [resolvable:$true] %s66_s0 }
   0xd   :  { %48 = dma.hbm_to_vmem [thread:$0]  %s41_s9, 128, %s43_s12, [#allocation6], %s724_s1, %s724_s1, %s725_s6  }
   0xe   :  { %s728_s15 = smov [#allocation10]  }
   0xf   :  { %s68_s16 = sshll.u32 %s728_s15, 4  ;;  %s69_s16 = int_to_ptr.vmem [resolvable:$true] %s68_s16 }
  0x10   :  { %74 = dma.hbm_to_vmem [thread:$0]  %s67_s0, 1024, %s69_s16, [#allocation9], %s724_s1, %s724_s1, %s725_s6  }
  0x11   :  { %714 = dma.done.wait [#allocation3], 128  }
  0x12   :  { %715 = vsyncadd [#allocation3], 4294967168 }
  0x13   :  { %716 = dma.done.wait [#allocation6], 256  }
  0x14   :  { %717 = vsyncadd [#allocation6], 4294967040 }
  0x15   :  { %718 = dma.done.wait [#allocation9], 2048  }
  0x16   :  { %719 = vsyncadd [#allocation9], 4294965248  ;;  %vm99_vm0 = vcmask 130048   ;;  %v529_v0 = vld [vmem:[#allocation7] sm:$0xff]  ;;  %v96_v1 = vld [vmem:[#allocation2] sm:$0xff]  ;;  %s729_s2 = smov [#allocation11]  }
  0x17   :  { %v100_v2 = vsel %vm99_vm0, %v96_v1, 0.0  ;;  %v107_v3 = vmul.f32 %v96_v1, %v96_v1  ;;  %156 = vmatpush.bf16.msra.mxu0 %v529_v0  ;;  %v97_v27 = vld [vmem:[#allocation5] sm:$0x1]  ;;  %v98_v31 = vld [vmem:[#allocation5 + $0x1] sm:$0x1]  ;;  %v537_v39 = vld [vmem:[#allocation8 + $0x38] sm:$0xff] }
  0x18   :  { %v101_v4 = vrot.slane %v100_v2, 4  ;;  %265 = vmatpush.bf16.msra.mxu1 %v537_v39  ;;  %v536_v40 = vld [vmem:[#allocation8 + $0x30] sm:$0xff]  ;;  %v535_v41 = vld [vmem:[#allocation8 + $0x28] sm:$0xff]  ;;  %v534_v42 = vld [vmem:[#allocation8 + $0x20] sm:$0xff]  ;;  %s446_s4 = sshll.u32 %s729_s2, 4  ;;  %s448_s19 = sshll.u32 %s786_s5, 4  ;;  %s447_s4 = int_to_ptr.vmem [resolvable:$true] %s446_s4  ;;  %s449_s19 = int_to_ptr.hbm [resolvable:$true] %s448_s19 }
  0x19   :  { %v108_v5 = vsel %vm99_vm0, %v107_v3, 0.0  ;;  %v533_v43 = vld [vmem:[#allocation8 + $0x18] sm:$0xff]  ;;  %v532_v47 = vld [vmem:[#allocation8 + $0x10] sm:$0xff]  ;;  %v531_v52 = vld [vmem:[#allocation8 + $0x8] sm:$0xff] }
  0x1a   :  { %v102_v6 = vadd.f32 %v101_v4, %v100_v2  ;;  %v109_v7 = vrot.slane %v108_v5, 4  ;;  %v530_v58 = vld [vmem:[#allocation8] sm:$0xff] }
  0x1c   :  { %v103_v8 = vrot.slane %v102_v6, 2  ;;  %v110_v9 = vadd.f32 %v109_v7, %v108_v5  ;;  %266 = vmatpush.bf16.msra.mxu1 %v536_v40  ;;  %v538_v40 = vld [vmem:[#allocation10] sm:$0xff] }
  0x1e   :  { %v104_v10 = vadd.f32 %v103_v8, %v102_v6  ;;  %v111_v11 = vrot.slane %v110_v9, 2  ;;  %v162_v8 = vld [vmem:[#allocation5 + $0x2] sm:$0x1] }
  0x20   :  { %v105_v12 = vrot.slane %v104_v10, 1  ;;  %v112_v13 = vadd.f32 %v111_v11, %v110_v9  ;;  %267 = vmatpush.bf16.msra.mxu1 %v535_v41 }
  0x22   :  { %v106_v14 = vadd.f32 %v105_v12, %v104_v10  ;;  %v113_v15 = vrot.slane %v112_v13, 1  ;;  %v163_v12 = vld [vmem:[#allocation5 + $0x3] sm:$0x1] }
  0x24   :  { %v114_v16 = vadd.f32 %v113_v15, %v112_v13  ;;  %v115_v17 = vmul.f32 0.125, %v106_v14  ;;  %268 = vmatpush.bf16.msra.mxu1 %v534_v42 }
  0x26   :  { %v116_v18 = vmul.f32 0.125, %v114_v16  ;;  %v117_v19 = vmul.f32 %v115_v17, %v115_v17 }
  0x28   :  { %v118_v20 = vsub.f32 %v116_v18, %v117_v19  ;;  %269 = vmatpush.bf16.msra.mxu1 %v533_v43 }
  0x2a   :  { %v119_v21 = vadd.f32 1e-05, %v118_v20 }
  0x2c   :  { %554 = vrsqrt.f32 %v119_v21  ;;  %vm126_vm1 = vweird.f32 %v119_v21  ;;  %270 = vmatpush.bf16.msra.mxu1 %v532_v47 }
  0x30   :  { %271 = vmatpush.bf16.msra.mxu1 %v531_v52 }
  0x32   :  { %v555_v22 = vpop.eup %554 }
  0x33   :  { %v121_v23 = vmul.f32 %v555_v22, %v119_v21  ;;  %vm127_vm2 = vweird.f32 %v555_v22  ;;  %v545_v21 = vld [vmem:[#allocation10 + $0x38] sm:$0xff] }
  0x34   :  { %vm128_vm3 = vmor %vm126_vm1, %vm127_vm2  ;;  %272 = vmatpush.bf16.msra.mxu1 %v530_v58  ;;  %381 = vmatpush.bf16.msra.mxu2 %v545_v21  ;;  %v279_v58 = vld [vmem:[#allocation5 + $0x5] sm:$0x1] }
  0x35   :  { %v122_v24 = vmul.f32 %v555_v22, %v121_v23  ;;  %v543_v23 = vld [vmem:[#allocation10 + $0x28] sm:$0xff] }
  0x37   :  { %v123_v25 = vmul.f32 0.5, %v122_v24  ;;  %v542_v24 = vld [vmem:[#allocation10 + $0x20] sm:$0xff] }
  0x39   :  { %v124_v26 = vsub.f32 1.5, %v123_v25  ;;  %v541_v25 = vld [vmem:[#allocation10 + $0x18] sm:$0xff] }
  0x3b   :  { %v125_v28 = vmul.f32 %v555_v22, %v124_v26 }
  0x3d   :  { %v129_v29 = vsel %vm128_vm3, %v555_v22, %v125_v28  ;;  %v544_v22 = vld [vmem:[#allocation10 + $0x30] sm:$0xff] }
  0x3e   :  { %v130_v30 = vmul.f32 %v129_v29, %v97_v27  ;;  %382 = vmatpush.bf16.msra.mxu2 %v544_v22  ;;  %v540_v29 = vld [vmem:[#allocation10 + $0x10] sm:$0xff] }
  0x40   :  { %v131_v32 = vmul.f32 %v130_v30, %v115_v17  ;;  %v133_v33 = vperm.slane %v130_v30, 0 }
  0x42   :  { %v132_v34 = vsub.f32 %v98_v31, %v131_v32  ;;  %v134_v35 = vmul.f32 %v133_v33, %v96_v1  ;;  %383 = vmatpush.bf16.msra.mxu2 %v543_v23 }
  0x44   :  { %v135_v36 = vperm.slane %v132_v34, 0  ;;  %v539_v34 = vld [vmem:[#allocation10 + $0x8] sm:$0xff] }
  0x46   :  { %v136_v37 = vadd.f32 %v135_v36, %v134_v35  ;;  %384 = vmatpush.bf16.msra.mxu2 %v542_v24 }
  0x48   :  { %v137_v38 = vpack.c.bf16 %v136_v37, %v136_v37 }
  0x4a   :  { %464 = vmatmul.msk.bf16.vlgmr.msra.gmra.mxu0 %vm99_vm0, %v137_v38  ;;  %385 = vmatpush.bf16.msra.mxu2 %v541_v25 }
  0x4e   :  { %386 = vmatpush.bf16.msra.mxu2 %v540_v29 }
  0x52   :  { %387 = vmatpush.bf16.msra.mxu2 %v539_v34 }
  0x56   :  { %388 = vmatpush.bf16.msra.mxu2 %v538_v40 }
  0xc7   :  { %v158_v44 = vpop.f32.mrf.mxu0 }
  0xc8   :  { %v164_v45 = vrot.slane %v158_v44, 4  ;;  %v170_v46 = vmul.f32 %v158_v44, %v158_v44 }
  0xca   :  { %v165_v48 = vadd.f32 %v164_v45, %v158_v44  ;;  %v171_v49 = vrot.slane %v170_v46, 4 }
  0xcc   :  { %v166_v50 = vrot.slane %v165_v48, 2  ;;  %v172_v51 = vadd.f32 %v171_v49, %v170_v46 }
  0xce   :  { %v167_v53 = vadd.f32 %v166_v50, %v165_v48  ;;  %v173_v54 = vrot.slane %v172_v51, 2 }
  0xcf   :  { %v160_v55 = vpop.f32.mrf.mxu0 }
  0xd0   :  { %v168_v56 = vrot.slane %v167_v53, 1  ;;  %v174_v57 = vadd.f32 %v173_v54, %v172_v51  ;;  %v278_v54 = vld [vmem:[#allocation5 + $0x4] sm:$0x1] }
  0xd2   :  { %v169_v59 = vadd.f32 %v168_v56, %v167_v53  ;;  %v175_v60 = vrot.slane %v174_v57, 1 }
  0xd4   :  { %v176_v61 = vadd.f32 %v175_v60, %v174_v57  ;;  %v177_v62 = vmul.f32 0.125, %v169_v59 }
  0xd6   :  { %v178_v63 = vmul.f32 0.125, %v176_v61  ;;  %v179_v0 = vmul.f32 %v177_v62, %v177_v62 }
  0xd8   :  { %v180_v1 = vsub.f32 %v178_v63, %v179_v0 }
  0xda   :  { %v181_v2 = vadd.f32 1e-05, %v180_v1 }
  0xdc   :  { %556 = vrsqrt.f32 %v181_v2  ;;  %vm188_vm5 = vweird.f32 %v181_v2 }
  0xe2   :  { %v557_v3 = vpop.eup %556 }
  0xe3   :  { %v183_v4 = vmul.f32 %v557_v3, %v181_v2  ;;  %vm189_vm4 = vweird.f32 %v557_v3 }
  0xe4   :  { %vm190_vm6 = vmor %vm188_vm5, %vm189_vm4 }
  0xe5   :  { %v184_v5 = vmul.f32 %v557_v3, %v183_v4 }
  0xe7   :  { %v185_v6 = vmul.f32 0.5, %v184_v5 }
  0xe9   :  { %v186_v7 = vsub.f32 1.5, %v185_v6 }
  0xeb   :  { %v187_v9 = vmul.f32 %v557_v3, %v186_v7 }
  0xed   :  { %v191_v10 = vsel %vm190_vm6, %v557_v3, %v187_v9 }
  0xee   :  { %v192_v11 = vmul.f32 %v191_v10, %v162_v8 }
  0xf0   :  { %v193_v13 = vmul.f32 %v192_v11, %v177_v62  ;;  %v195_v14 = vperm.slane %v192_v11, 0 }
  0xf2   :  { %v194_v15 = vsub.f32 %v163_v12, %v193_v13  ;;  %v196_v16 = vmul.f32 %v195_v14, %v158_v44 }
  0xf4   :  { %v197_v17 = vperm.slane %v194_v15, 0 }
  0xf6   :  { %v198_v18 = vadd.f32 %v197_v17, %v196_v16 }
  0xf8   :  { %558 = vtanh.f32 %v198_v18 }
  0xfe   :  { %v559_v19 = vpop.eup %558 }
  0xff   :  { %v200_v20 = vpack.c.bf16 %v559_v19, %v559_v19 }
 0x101   :  { %273 = vmatmul.bf16.vlgmr.msra.gmra.mxu1 %v200_v20 }
 0x17e   :  { %v274_v26 = vpop.f32.mrf.mxu1 }
 0x17f   :  { %v280_v27 = vrot.slane %v274_v26, 4  ;;  %v286_v28 = vmul.f32 %v274_v26, %v274_v26 }
 0x181   :  { %v281_v30 = vadd.f32 %v280_v27, %v274_v26  ;;  %v287_v31 = vrot.slane %v286_v28, 4 }
 0x183   :  { %v282_v32 = vrot.slane %v281_v30, 2  ;;  %v288_v33 = vadd.f32 %v287_v31, %v286_v28  ;;  %v394_v28 = vld [vmem:[#allocation5 + $0x6] sm:$0x1] }
 0x185   :  { %v283_v35 = vadd.f32 %v282_v32, %v281_v30  ;;  %v289_v36 = vrot.slane %v288_v33, 2  ;;  %v395_v32 = vld [vmem:[#allocation5 + $0x7] sm:$0x1] }
 0x186   :  { %v276_v37 = vpop.f32.mrf.mxu1 }
 0x187   :  { %v284_v38 = vrot.slane %v283_v35, 1  ;;  %v290_v39 = vadd.f32 %v289_v36, %v288_v33 }
 0x189   :  { %v285_v41 = vadd.f32 %v284_v38, %v283_v35  ;;  %v291_v42 = vrot.slane %v290_v39, 1 }
 0x18b   :  { %v292_v43 = vadd.f32 %v291_v42, %v290_v39  ;;  %v293_v44 = vmul.f32 0.125, %v285_v41 }
 0x18d   :  { %v294_v45 = vmul.f32 0.125, %v292_v43  ;;  %v295_v46 = vmul.f32 %v293_v44, %v293_v44 }
 0x18f   :  { %v296_v47 = vsub.f32 %v294_v45, %v295_v46 }
 0x191   :  { %v297_v48 = vadd.f32 1e-05, %v296_v47 }
 0x193   :  { %560 = vrsqrt.f32 %v297_v48  ;;  %vm304_vm8 = vweird.f32 %v297_v48 }
 0x199   :  { %v561_v49 = vpop.eup %560 }
 0x19a   :  { %v299_v50 = vmul.f32 %v561_v49, %v297_v48  ;;  %vm305_vm7 = vweird.f32 %v561_v49 }
 0x19b   :  { %vm306_vm9 = vmor %vm304_vm8, %vm305_vm7 }
 0x19c   :  { %v300_v51 = vmul.f32 %v561_v49, %v299_v50 }
 0x19e   :  { %v301_v52 = vmul.f32 0.5, %v300_v51 }
 0x1a0   :  { %v302_v53 = vsub.f32 1.5, %v301_v52 }
 0x1a2   :  { %v303_v55 = vmul.f32 %v561_v49, %v302_v53 }
 0x1a4   :  { %v307_v56 = vsel %vm306_vm9, %v561_v49, %v303_v55 }
 0x1a5   :  { %v308_v57 = vmul.f32 %v307_v56, %v278_v54 }
 0x1a7   :  { %v309_v59 = vmul.f32 %v308_v57, %v293_v44  ;;  %v311_v60 = vperm.slane %v308_v57, 0 }
 0x1a9   :  { %v310_v61 = vsub.f32 %v279_v58, %v309_v59  ;;  %v312_v62 = vmul.f32 %v311_v60, %v274_v26 }
 0x1ab   :  { %v313_v63 = vperm.slane %v310_v61, 0 }
 0x1ad   :  { %v314_v0 = vadd.f32 %v313_v63, %v312_v62 }
 0x1af   :  { %562 = vtanh.f32 %v314_v0 }
 0x1b5   :  { %v563_v1 = vpop.eup %562 }
 0x1b6   :  { %v316_v2 = vpack.c.bf16 %v563_v1, %v563_v1 }
 0x1b8   :  { %389 = vmatmul.bf16.vlgmr.msra.gmra.mxu2 %v316_v2 }
 0x23b   :  { %v390_v3 = vpop.f32.mrf.mxu2 }
 0x23c   :  { %v396_v4 = vrot.slane %v390_v3, 4  ;;  %v402_v5 = vmul.f32 %v390_v3, %v390_v3 }
 0x23e   :  { %v397_v6 = vadd.f32 %v396_v4, %v390_v3  ;;  %v403_v7 = vrot.slane %v402_v5, 4 }
 0x240   :  { %v398_v8 = vrot.slane %v397_v6, 2  ;;  %v404_v9 = vadd.f32 %v403_v7, %v402_v5 }
 0x242   :  { %v399_v10 = vadd.f32 %v398_v8, %v397_v6  ;;  %v405_v11 = vrot.slane %v404_v9, 2 }
 0x243   :  { %v392_v12 = vpop.f32.mrf.mxu2 }
 0x244   :  { %v400_v13 = vrot.slane %v399_v10, 1  ;;  %v406_v14 = vadd.f32 %v405_v11, %v404_v9 }
 0x246   :  { %v401_v15 = vadd.f32 %v400_v13, %v399_v10  ;;  %v407_v16 = vrot.slane %v406_v14, 1 }
 0x248   :  { %v408_v17 = vadd.f32 %v407_v16, %v406_v14  ;;  %v409_v18 = vmul.f32 0.125, %v401_v15 }
 0x24a   :  { %v410_v19 = vmul.f32 0.125, %v408_v17  ;;  %v411_v20 = vmul.f32 %v409_v18, %v409_v18 }
 0x24c   :  { %v412_v21 = vsub.f32 %v410_v19, %v411_v20 }
 0x24e   :  { %v413_v22 = vadd.f32 1e-05, %v412_v21 }
 0x250   :  { %564 = vrsqrt.f32 %v413_v22  ;;  %vm420_vm11 = vweird.f32 %v413_v22 }
 0x256   :  { %v565_v23 = vpop.eup %564 }
 0x257   :  { %v415_v24 = vmul.f32 %v565_v23, %v413_v22  ;;  %vm421_vm10 = vweird.f32 %v565_v23 }
 0x258   :  { %vm422_vm12 = vmor %vm420_vm11, %vm421_vm10 }
 0x259   :  { %v416_v25 = vmul.f32 %v565_v23, %v415_v24 }
 0x25b   :  { %v417_v26 = vmul.f32 0.5, %v416_v25 }
 0x25d   :  { %v418_v27 = vsub.f32 1.5, %v417_v26 }
 0x25f   :  { %v419_v29 = vmul.f32 %v565_v23, %v418_v27 }
 0x261   :  { %v423_v30 = vsel %vm422_vm12, %v565_v23, %v419_v29 }
 0x262   :  { %v424_v31 = vmul.f32 %v423_v30, %v394_v28 }
 0x264   :  { %v425_v33 = vmul.f32 %v424_v31, %v409_v18  ;;  %v427_v34 = vperm.slane %v424_v31, 0 }
 0x266   :  { %v426_v35 = vsub.f32 %v395_v32, %v425_v33  ;;  %v428_v36 = vmul.f32 %v427_v34, %v390_v3 }
 0x268   :  { %v429_v37 = vperm.slane %v426_v35, 0 }
 0x26a   :  { %v430_v38 = vadd.f32 %v429_v37, %v428_v36 }
 0x26c   :  { %v432_v39 = vand.u32 2147483647, %v430_v38  ;;  %v431_v45 = vmax.f32 %v430_v38, 0.0 }
 0x26e   :  { %v433_v40 = vsub.f32 0.0, %v432_v39 }
 0x270   :  { %v434_v41 = vmul.f32 1.442695, %v433_v40 }
 0x272   :  { %566 = vpow2.f32 %v434_v41 }
 0x278   :  { %v567_v42 = vpop.eup %566 }
 0x279   :  { %v436_v43 = vadd.f32 1.0, %v567_v42 }
 0x27b   :  { %568 = vlog2.f32 %v436_v43 }
 0x281   :  { %v569_v44 = vpop.eup %568 }
 0x282   :  { %v438_v46 = vmul.f32 0.6931472, %v569_v44 }
 0x284   :  { %v439_v47 = vadd.f32 %v438_v46, %v431_v45 }
 0x286   :  { %440 = vst [vmem:[#allocation11] sm:$0xff] %v439_v47 }
 0x287   :  { %451 = dma.vmem_to_hbm [thread:$0]  %s447_s4, 128, %s449_s19, [#allocation4]  }
 0x288   :  { %720 = dma.done.wait [#allocation4], 128  }
 0x289   :  { %721 = vsyncadd [#allocation4], 4294967168 }
 0x28a   :  { %456 = vsyncpa [#allocation3], 1 }
 0x28b   :  { %457 = vsyncpa [#allocation6], 1 }
 0x28c   :  { %458 = vsyncpa [#allocation9], 1 }
 0x28d   :  { %459 = vsyncpa [#allocation4], 1 }

</bundles_post_ra>
